<compile_context>
chip_gen: v6e
topology: v6e:2x2x1
jax: 0.10.0
libtpu: 0.0.40
codegen_flags: <defaults>
</compile_context>

<pallas_src>
import functools

import jax
import jax.numpy as jnp
from jax import lax
from jax.experimental import pallas as pl
from jax.experimental.pallas import tpu as pltpu


# --------------------------------------------------------------------------
# Kernel 1 (grid over batch, "parallel"): normalized aggregation + BN partials
# --------------------------------------------------------------------------
def gcn_agg_kernel(h_ref, adj_ref, w_ref, b_ref, pre_ref, mom_ref):
    h = h_ref[...]                                   # (N, H) f32
    adj = adj_ref[...]                               # (N, N) f32

    # deg of (A + I); adj is non-negative so deg >= 1 and no inf guard needed.
    deg = jnp.sum(adj, axis=-1, keepdims=True) + 1.0  # (N, 1)
    dinv = lax.rsqrt(deg)                             # D^{-1/2} diagonal

    # linear: h @ W^T + b   (bf16 MXU operands, f32 accumulation)
    h_lin = lax.dot_general(
        h.astype(jnp.bfloat16), w_ref[...].astype(jnp.bfloat16),
        (((1,), (1,)), ((), ())),
        preferred_element_type=jnp.float32) + b_ref[...]          # (N, H)

    # Fold D^{-1/2} into the features instead of materializing A_hat:
    #   A_hat @ h_lin = dinv * (adj @ (dinv * h_lin) + dinv * h_lin)
    x = dinv * h_lin                                              # (N, H) f32
    agg = jnp.dot(adj.astype(jnp.bfloat16), x.astype(jnp.bfloat16),
                  preferred_element_type=jnp.float32)             # (N, H)
    pre = dinv * (agg + x)       # identity term added post-matmul, in f32

    pre_ref[...] = pre
    # Per-batch BatchNorm partials (one-pass: sum and sum of squares).
    mom_ref[0:1, :] = jnp.sum(pre, axis=0, keepdims=True)
    mom_ref[1:2, :] = jnp.sum(pre * pre, axis=0, keepdims=True)


# --------------------------------------------------------------------------
# Kernel 2 (grid over batch, "parallel"): BN finalize + relu + residual
# --------------------------------------------------------------------------
def gcn_bn_kernel(pre_ref, h_ref, mom_ref, gamma_ref, beta_ref, resw_ref,
                  out_ref, *, inv_count):
    pre = pre_ref[...]                               # (N, H) f32
    mom = mom_ref[...]                               # (B, 2, H) f32 (tiny)

    tot = jnp.sum(mom, axis=0)                       # (2, H) reduce over batch
    mean = tot[0:1, :] * inv_count                   # (1, H)
    ex2 = tot[1:2, :] * inv_count
    var = ex2 - mean * mean                          # biased variance
    inv_std = lax.rsqrt(var + 1e-5)

    out = (pre - mean) * inv_std
    out = out * gamma_ref[...] + beta_ref[...]
    out = jnp.maximum(out, 0.0)                      # relu
    out = out + resw_ref[...] * h_ref[...]           # residual (res_w scalar)
    out_ref[...] = out


# --------------------------------------------------------------------------
# Wrappers
# --------------------------------------------------------------------------
def _gcn_pre(h, adj, W, b):
    B, N, H = h.shape
    return pl.pallas_call(
        gcn_agg_kernel,
        grid=(B,),
        out_shape=(jax.ShapeDtypeStruct((B, N, H), jnp.float32),
                   jax.ShapeDtypeStruct((B, 2, H), jnp.float32)),
        in_specs=[
            pl.BlockSpec((None, N, H), lambda i: (i, 0, 0)),   # h
            pl.BlockSpec((None, N, N), lambda i: (i, 0, 0)),   # adj
            pl.BlockSpec((H, H), lambda i: (0, 0)),            # W (resident)
            pl.BlockSpec((1, H), lambda i: (0, 0)),            # bias
        ],
        out_specs=(
            pl.BlockSpec((None, N, H), lambda i: (i, 0, 0)),   # pre-BN out
            pl.BlockSpec((None, 2, H), lambda i: (i, 0, 0)),   # BN partials
        ),
        compiler_params=pltpu.CompilerParams(
            dimension_semantics=("parallel",)),
    )(h, adj, W, b)


def _gcn_bn(pre, mom, h, gamma, beta, res_w):
    B, N, H = pre.shape
    kern = functools.partial(gcn_bn_kernel, inv_count=1.0 / float(B * N))
    return pl.pallas_call(
        kern,
        grid=(B,),
        out_shape=jax.ShapeDtypeStruct((B, N, H), jnp.float32),
        in_specs=[
            pl.BlockSpec((None, N, H), lambda i: (i, 0, 0)),   # pre
            pl.BlockSpec((None, N, H), lambda i: (i, 0, 0)),   # h (residual)
            pl.BlockSpec((B, 2, H), lambda i: (0, 0, 0)),      # moments (full)
            pl.BlockSpec((1, H), lambda i: (0, 0)),            # gamma
            pl.BlockSpec((1, H), lambda i: (0, 0)),            # beta
            pl.BlockSpec((1, 1), lambda i: (0, 0)),            # res_w
        ],
        out_specs=pl.BlockSpec((None, N, H), lambda i: (i, 0, 0)),
        compiler_params=pltpu.CompilerParams(
            dimension_semantics=("parallel",)),
    )(pre, h, mom, gamma, beta, res_w)


def gcn_layer(h, adj, W, b, gamma, beta, res_w):
    pre, mom = _gcn_pre(h, adj, W, b)
    return _gcn_bn(pre, mom, h, gamma, beta, res_w)


# --------------------------------------------------------------------------
# Pure-JAX f32 reference (mirrors the PyTorch forward exactly)
# --------------------------------------------------------------------------
def gcn_layer_ref(h, adj, W, b, gamma, beta, res_w):
    N = adj.shape[-1]
    A = adj + jnp.eye(N, dtype=adj.dtype)[None]
    deg = A.sum(-1)
    dinv = jnp.where(deg > 0, deg ** -0.5, 0.0)
    A_hat = A * dinv[:, :, None] * dinv[:, None, :]
    h_lin = h @ W.T + b[0]
    out = jnp.einsum('bij,bjk->bik', A_hat, h_lin)
    mean = out.mean(axis=(0, 1))
    var = ((out - mean) ** 2).mean(axis=(0, 1))
    out = (out - mean) / jnp.sqrt(var + 1e-5) * gamma[0] + beta[0]
    out = jnp.maximum(out, 0.0)
    return out + res_w[0, 0] * h


if __name__ == "__main__":
    B, N, H = 2, 16, 32

    key = jax.random.PRNGKey(0)
    k_h, k_adj, k_w = jax.random.split(key, 3)

    # Inputs
    h = jax.random.normal(k_h, (B, N, H), dtype=jnp.float32)
    # Random symmetric 0/1 adjacency, zero diagonal
    a = (jax.random.uniform(k_adj, (B, N, N)) < 0.3).astype(jnp.float32)
    adj = jnp.clip(a + jnp.swapaxes(a, -1, -2), 0.0, 1.0)
    adj = adj * (1.0 - jnp.eye(N, dtype=jnp.float32)[None])

    # Parameters (mirrors reset_parameters): xavier_uniform weight, zero bias,
    # BN gamma=1 / beta=0, res_weight=0.
    bound = (6.0 / (H + H)) ** 0.5
    W = jax.random.uniform(k_w, (H, H), minval=-bound, maxval=bound,
                           dtype=jnp.float32)
    bvec = jnp.zeros((1, H), dtype=jnp.float32)
    gamma = jnp.ones((1, H), dtype=jnp.float32)
    beta = jnp.zeros((1, H), dtype=jnp.float32)
    res_w = jnp.zeros((1, 1), dtype=jnp.float32)

    out = gcn_layer(h, adj, W, bvec, gamma, beta, res_w)
    jax.block_until_ready(out)

    ref = gcn_layer_ref(h, adj, W, bvec, gamma, beta, res_w)
    assert out.shape == (B, N, H)
    # bf16 MXU operands (f32 accumulation) -> compare to f32 ref with loose tol.
    assert jnp.allclose(out, ref, atol=3e-2, rtol=3e-2), "mismatch vs reference"

    print("KERNEL_OK")
</pallas_src>

<mosaic_0001>
module attributes {stable_mosaic.version = 11 : i64} {
  func.func @gcn_agg_kernel(%arg0: i32, %arg1: memref<1x16x32xf32, #tpu.memory_space<vmem>>, %arg2: memref<1x16x16xf32, #tpu.memory_space<vmem>>, %arg3: memref<32x32xf32, #tpu.memory_space<vmem>>, %arg4: memref<1x32xf32, #tpu.memory_space<vmem>>, %arg5: memref<1x16x32xf32, #tpu.memory_space<vmem>>, %arg6: memref<1x2x32xf32, #tpu.memory_space<vmem>>) attributes {dimension_semantics = [#tpu.dimension_semantics<parallel>], iteration_bounds = array<i64: 2>, scalar_prefetch = 0 : i64, scratch_operands = 0 : i64, tpu.core_type = #tpu.core_type<tc>, window_params = [{transform_indices = @transform_0, window_bounds = array<i64: 1, 16, 32>}, {transform_indices = @transform_1, window_bounds = array<i64: 1, 16, 16>}, {pipeline_mode = #tpu.pipeline_mode<synchronous>, transform_indices = @transform_2, window_bounds = array<i64: 32, 32>}, {pipeline_mode = #tpu.pipeline_mode<synchronous>, transform_indices = @transform_3, window_bounds = array<i64: 1, 32>}, {transform_indices = @transform_4, window_bounds = array<i64: 1, 16, 32>}, {transform_indices = @transform_5, window_bounds = array<i64: 1, 2, 32>}]} {
    %c0 = arith.constant 0 : index
    %c0_0 = arith.constant 0 : index
    %c0_1 = arith.constant 0 : index
    %0 = vector.load %arg1[%c0, %c0_0, %c0_1] : memref<1x16x32xf32, #tpu.memory_space<vmem>>, vector<1x16x32xf32>
    %1 = vector.shape_cast %0 : vector<1x16x32xf32> to vector<16x32xf32>
    %c0_2 = arith.constant 0 : index
    %c0_3 = arith.constant 0 : index
    %c0_4 = arith.constant 0 : index
    %2 = vector.load %arg2[%c0_2, %c0_3, %c0_4] : memref<1x16x16xf32, #tpu.memory_space<vmem>>, vector<1x16x16xf32>
    %3 = vector.shape_cast %2 : vector<1x16x16xf32> to vector<16x16xf32>
    %cst = arith.constant dense<0.000000e+00> : vector<16xf32>
    %4 = vector.multi_reduction <add>, %3, %cst [1] : vector<16x16xf32> to vector<16xf32>
    %5 = vector.shape_cast %4 : vector<16xf32> to vector<16x1xf32>
    %cst_5 = arith.constant 1.000000e+00 : f32
    %6 = vector.broadcast %cst_5 : f32 to vector<16x1xf32>
    %7 = arith.addf %5, %6 : vector<16x1xf32>
    %8 = math.rsqrt %7 : vector<16x1xf32>
    %9 = arith.truncf %1 : vector<16x32xf32> to vector<16x32xbf16>
    %c0_6 = arith.constant 0 : index
    %c0_7 = arith.constant 0 : index
    %10 = vector.load %arg3[%c0_6, %c0_7] : memref<32x32xf32, #tpu.memory_space<vmem>>, vector<32x32xf32>
    %11 = arith.truncf %10 : vector<32x32xf32> to vector<32x32xbf16>
    %cst_8 = arith.constant dense<0.000000e+00> : vector<16x32xf32>
    %12 = tpu.matmul %9, %11, %cst_8 {dimension_numbers = #tpu.dot_dimension_numbers<[1], [1], [0], [0], [0, 0, 1, 0], [], []>} : vector<16x32xbf16>, vector<32x32xbf16>, vector<16x32xf32> -> vector<16x32xf32>
    %c0_9 = arith.constant 0 : index
    %c0_10 = arith.constant 0 : index
    %13 = vector.load %arg4[%c0_9, %c0_10] : memref<1x32xf32, #tpu.memory_space<vmem>>, vector<1x32xf32>
    %14 = vector.broadcast %13 : vector<1x32xf32> to vector<16x32xf32>
    %15 = arith.addf %12, %14 : vector<16x32xf32>
    %16 = vector.broadcast %8 : vector<16x1xf32> to vector<16x32xf32>
    %17 = arith.mulf %16, %15 : vector<16x32xf32>
    %18 = arith.truncf %3 : vector<16x16xf32> to vector<16x16xbf16>
    %19 = arith.truncf %17 : vector<16x32xf32> to vector<16x32xbf16>
    %cst_11 = arith.constant dense<0.000000e+00> : vector<16x32xf32>
    %20 = tpu.matmul %18, %19, %cst_11 {dimension_numbers = #tpu.dot_dimension_numbers<[1], [0], [0], [1], [0, 0, 1, 1], [], []>} : vector<16x16xbf16>, vector<16x32xbf16>, vector<16x32xf32> -> vector<16x32xf32>
    %21 = arith.addf %20, %17 : vector<16x32xf32>
    %22 = vector.broadcast %8 : vector<16x1xf32> to vector<16x32xf32>
    %23 = arith.mulf %22, %21 : vector<16x32xf32>
    %c0_12 = arith.constant 0 : index
    %c0_13 = arith.constant 0 : index
    %c0_14 = arith.constant 0 : index
    %24 = vector.load %arg5[%c0_12, %c0_13, %c0_14] : memref<1x16x32xf32, #tpu.memory_space<vmem>>, vector<1x16x32xf32>
    %25 = vector.shape_cast %24 : vector<1x16x32xf32> to vector<16x32xf32>
    %26 = vector.shape_cast %23 : vector<16x32xf32> to vector<1x16x32xf32>
    tpu.vector_store %arg5[%c0_12, %c0_13, %c0_14], %26 {strides = array<i32>} : memref<1x16x32xf32, #tpu.memory_space<vmem>>, vector<1x16x32xf32>,
    %cst_15 = arith.constant dense<0.000000e+00> : vector<32xf32>
    %27 = vector.multi_reduction <add>, %23, %cst_15 [0] : vector<16x32xf32> to vector<32xf32>
    %28 = vector.shape_cast %27 : vector<32xf32> to vector<1x32xf32>
    %c0_16 = arith.constant 0 : index
    %c0_17 = arith.constant 0 : index
    %c0_18 = arith.constant 0 : index
    %29 = vector.load %arg6[%c0_16, %c0_17, %c0_18] : memref<1x2x32xf32, #tpu.memory_space<vmem>>, vector<1x1x32xf32>
    %30 = vector.shape_cast %29 : vector<1x1x32xf32> to vector<1x32xf32>
    %31 = vector.shape_cast %28 : vector<1x32xf32> to vector<1x1x32xf32>
    tpu.vector_store %arg6[%c0_16, %c0_17, %c0_18], %31 {strides = array<i32>} : memref<1x2x32xf32, #tpu.memory_space<vmem>>, vector<1x1x32xf32>,
    %32 = arith.mulf %23, %23 : vector<16x32xf32>
    %cst_19 = arith.constant dense<0.000000e+00> : vector<32xf32>
    %33 = vector.multi_reduction <add>, %32, %cst_19 [0] : vector<16x32xf32> to vector<32xf32>
    %34 = vector.shape_cast %33 : vector<32xf32> to vector<1x32xf32>
    %c0_20 = arith.constant 0 : index
    %c1 = arith.constant 1 : index
    %c0_21 = arith.constant 0 : index
    %35 = vector.load %arg6[%c0_20, %c1, %c0_21] : memref<1x2x32xf32, #tpu.memory_space<vmem>>, vector<1x1x32xf32>
    %36 = vector.shape_cast %35 : vector<1x1x32xf32> to vector<1x32xf32>
    %37 = vector.shape_cast %34 : vector<1x32xf32> to vector<1x1x32xf32>
    tpu.vector_store %arg6[%c0_20, %c1, %c0_21], %37 {strides = array<i32>} : memref<1x2x32xf32, #tpu.memory_space<vmem>>, vector<1x1x32xf32>,
    return
  }
  func.func @transform_0(%arg0: i32) -> (i32, i32, i32) {
    %c0_i32 = arith.constant 0 : i32
    %c0_i32_0 = arith.constant 0 : i32
    %c0_i32_1 = arith.constant 0 : i32
    return %arg0, %c0_i32, %c0_i32_0 : i32, i32, i32
  }
  func.func @transform_1(%arg0: i32) -> (i32, i32, i32) {
    %c0_i32 = arith.constant 0 : i32
    %c0_i32_0 = arith.constant 0 : i32
    %c0_i32_1 = arith.constant 0 : i32
    return %arg0, %c0_i32, %c0_i32_0 : i32, i32, i32
  }
  func.func @transform_2(%arg0: i32) -> (i32, i32) {
    %c0_i32 = arith.constant 0 : i32
    %c0_i32_0 = arith.constant 0 : i32
    %c0_i32_1 = arith.constant 0 : i32
    return %c0_i32, %c0_i32_0 : i32, i32
  }
  func.func @transform_3(%arg0: i32) -> (i32, i32) {
    %c0_i32 = arith.constant 0 : i32
    %c0_i32_0 = arith.constant 0 : i32
    %c0_i32_1 = arith.constant 0 : i32
    return %c0_i32, %c0_i32_0 : i32, i32
  }
  func.func @transform_4(%arg0: i32) -> (i32, i32, i32) {
    %c0_i32 = arith.constant 0 : i32
    %c0_i32_0 = arith.constant 0 : i32
    %c0_i32_1 = arith.constant 0 : i32
    return %arg0, %c0_i32, %c0_i32_0 : i32, i32, i32
  }
  func.func @transform_5(%arg0: i32) -> (i32, i32, i32) {
    %c0_i32 = arith.constant 0 : i32
    %c0_i32_0 = arith.constant 0 : i32
    %c0_i32_1 = arith.constant 0 : i32
    return %arg0, %c0_i32, %c0_i32_0 : i32, i32, i32
  }
}

</mosaic_0001>

<bundles_post_ra>
// kernel: tpu_custom_call.1
= control target key start
LH: loop header
LB: loop body
LE: loop exit
PB: predicated region body
PF: predicated region fallthrough
CT: control target
= control target key end

     0   :  { %s1258_s0 = inlined_call_operand.hbm [shape: f32[2,16,32], index: 0, kind: input, shape index: {}]   ;;  %s1259_s1 = inlined_call_operand.hbm [shape: f32[2,16,16], index: 1, kind: input, shape index: {}]   ;;  %s1260_s2 = inlined_call_operand.hbm [shape: f32[32,32], index: 2, kind: input, shape index: {}]   ;;  %s1261_s3 = inlined_call_operand.vmem [shape: f32[1,32], index: 3, kind: input, shape index: {}]   ;;  %s1262_s4 = inlined_call_operand.hbm [shape: f32[2,16,32], index: 4, kind: output, shape index: {0}]   ;;  %s1263_s5 = inlined_call_operand.hbm [shape: f32[2,2,32], index: 5, kind: output, shape index: {1}]  }
   0x1   :  { %1272 = sst [smem:[#allocation18_spill]] %s1258_s0 }
   0x2   :  { %1273 = sst [smem:[#allocation19_spill]] %s1260_s2 }
   0x3   :  { %11 = vsyncpa [#allocation3], 0 }
   0x4   :  { %13 = vsyncpa [#allocation3 + $0x1], 0 }
   0x5   :  { %14 = vsyncpa [#allocation6], 0 }
   0x6   :  { %16 = vsyncpa [#allocation6 + $0x1], 0 }
   0x7   :  { %17 = vsyncpa [#allocation4], 0 }
   0x8   :  { %19 = vsyncpa [#allocation4 + $0x1], 0 }
   0x9   :  { %20 = vsyncpa [#allocation10], 0 }
   0xa   :  { %22 = vsyncpa [#allocation10 + $0x1], 0  ;;  %s985_s18 = smov 0   ;;  %s987_s19 = smov 0  }
   0xb   :  { %s989_s20 = smov 0   ;;  %s991_s21 = smov 0  }
   0xc LB: > { %1274 = sst [smem:[#allocation16_spill]] %s938_s20  ;;  %s1006_s22 = sadd.s32 4294967295, %s942_s21   ;;  %s942_s21 = sphi %s991_s21, %s1297_s21   ;;  %s938_s20 = sphi %s989_s20, %s1294_s20   ;;  %s934_s19 = sphi %s987_s19, %s1296_s19   ;;  %s930_s18 = sphi %s985_s18, %s1295_s18  }
   0xd   : > { %s633_s23 = sadd.s32 4294967294, %s942_s21   ;;  %p48_p0 = scmp.ne.s32.totalorder %s934_s19, %s930_s18 }
   0xe   : > { %p1268_p1 = scmp.eq.s32.totalorder %s1006_s22, 0  ;;  %p146_p3 = scmp.eq.s32.totalorder %s633_s23, 1 }
   0xf   : > { %p634_p5 = scmp.ge.s32.totalorder %s942_s21, 1  ;;  %p179_p7 = scmp.lt.s32.totalorder %s942_s21, 3 }
  0x10   : > { %p1015_p4 = por %p1268_p1, %p48_p0  ;;  %p1020_p6 = por %p146_p3, %p48_p0 }
  0x11   : > { %p1025_p8 = pnand %p634_p5, %p179_p7  ;;  %s944_s27 = smov [#allocation7]  }
  0x12   : > { %s1275_s24 = scalar_select %p1015_p4, 1, 0 }
  0x13   : > { %s1276_s25 = scalar_select %p1020_p6, 1, 0 }
  0x14   : > { %s191_s28 = sshll.u32 %s944_s27, 4  ;;  %p693_p9 = pneg %p1025_p8  ;;  %s192_s28 = int_to_ptr.vmem [resolvable:$true] %s191_s28 }
  0x15   : > { %s1039_s30 = sadd.s32 1, %s942_s21   ;;  %s35_s6 = sadd.s32 1, %s938_s20 }
  0x16   : > { %p1034_p11 = pnand %p693_p9, %p1268_p1  ;;  %s32_s7 = ssub.s32 %s942_s21, %s1039_s30 }
  0x17   : > { %s769_s8 = scalar_lea.vmem %s192_s28, 512  ;;  %p777_p5 = scmp.lt.s32.totalorder %s192_s28, %s192_s28 }
  0x18   : > { %p760_p12 = pneg %p1034_p11  ;;  %p770_p13 = scmp.ne.s32.totalorder %s192_s28, %s769_s8 }
  0x19   : > { %p778_p7 = scmp.lt.s32.totalorder %s769_s8, %s769_s8 }
  0x1a   : > { %p772_p0 = pnand %p770_p13, %p760_p12 }
  0x1b   : > { %p779_p10 = por %p778_p7, %p777_p5 }
  0x1c   : > { %p773_p3 = pneg %p772_p0 }
  0x1e   : > { %p780_p2 = pnand %p779_p10, %p773_p3 }
  0x20   : > { %783 = shalt.err (!%p780_p2)
}
  0x21   : > { %s1264_s9 = smov 128   ;;  %s1266_s10 = smov 8  }
  0x22   : > { %s1279_s2 = sld [smem:[#allocation19_spill]]  ;;  %p33_p2 = scmp.eq.s32.totalorder %s32_s7, 0 }
  0x23   : > { %p42_p9 = scmp.ne.s32.totalorder %s938_s20, %s934_s19  ;;  %p43_p10 = scmp.eq.s32.totalorder %s942_s21, 0 }
  0x24   : > { %p712_p12 = scmp.lt.s32.totalorder %s942_s21, 2  ;;  %p1281_p0 = scmp.eq.s32.totalorder %s1006_s22, 1 }
  0x25   : > { %s1059_s13 = scalar_select %p33_p2, %s938_s20, %s35_s6  }
  0x26   : > { %p44_p13 = por %p43_p10, %p42_p9  ;;  %p1063_p3 = por %p1281_p0, %p42_p9 }
  0x27   : > { %1280 = sst [smem:[#allocation17_spill]] %s1059_s13  ;;  %s208_s15 = sand.u32 1, %s938_s20  }
  0x28   : > { %696 = dma.hbm_to_vmem [thread:$0]  (!%p1034_p11), %s1279_s2, 512, %s192_s28, [#allocation6], %s1264_s9, %s1264_s9, %s1266_s10  }
  0x29   : > { %s1282_s14 = scalar_select %p1063_p3, 1, 0 }
  0x2a   : > { %s659_s16 = sshll.u32 %s942_s21, 8  ;;  %s1069_s17 = sshll.u32 %s208_s15, 4 }
  0x2b   : > { %s1283_s0 = sld [smem:[#allocation18_spill]]  ;;  %s212_s29 = scalar_lea.vmem [#allocation2], %s1069_s17 }
  0x2c   : > { %s219_s6 = sshll.u32 %s212_s29, 4  ;;  %p1077_p11 = pnand %p712_p12, %p44_p13  ;;  %s1081_s6 = int_to_ptr.vmem [resolvable:$true] %s219_s6 }
  0x2d   : > { %s1086_s12 = scalar_lea.hbm %s1259_s1, %s659_s16  ;;  %s1088_s23 = scalar_lea.sflag [#allocation3], %s208_s15 }
  0x2e   : > { %p786_p7 = pneg %p1077_p11 }
  0x31   : > { %s1074_s28 = scalar_lea.hbm %s1283_s0, %s659_s16  ;;  %s789_s10 = scalar_lea.hbm %s1283_s0, 512 }
  0x32   : > { %s784_s27 = scalar_lea.hbm %s1074_s28, 256  ;;  %p790_p10 = scmp.lt.s32.totalorder %s1074_s28, %s1283_s0 }
  0x33   : > { %p785_p5 = scmp.ne.s32.totalorder %s1074_s28, %s784_s27  ;;  %p791_p12 = scmp.lt.s32.totalorder %s789_s10, %s784_s27 }
  0x35   : > { %p787_p2 = pnand %p786_p7, %p785_p5  ;;  %p792_p13 = por %p791_p12, %p790_p10 }
  0x37   : > { %p788_p9 = pneg %p787_p2 }
  0x39   : > { %p793_p0 = pnand %p792_p13, %p788_p9 }
  0x3b   : > { %796 = shalt.err (!%p793_p0)
}
  0x3c   : > { %s797_s15 = scalar_lea.vmem %s1081_s6, 256  ;;  %s947_s9 = smov [#allocation2]  }
  0x3d   : > { %p798_p1 = scmp.ne.s32.totalorder %s1081_s6, %s797_s15  ;;  %s802_s16 = sshll.u32 %s947_s9, 4  ;;  %s803_s16 = int_to_ptr.vmem [resolvable:$false] %s802_s16 }
  0x3e   : > { %s804_s8 = scalar_lea.vmem %s803_s16, 512  ;;  %p805_p6 = scmp.lt.s32.totalorder %s1081_s6, %s803_s16 }
  0x3f   : > { %p800_p5 = pnand %p798_p1, %p786_p7  ;;  %p806_p3 = scmp.lt.s32.totalorder %s804_s8, %s797_s15 }
  0x41   : > { %p801_p2 = pneg %p800_p5  ;;  %p807_p4 = por %p806_p3, %p805_p6 }
  0x43   : > { %p808_p10 = pnand %p807_p4, %p801_p2 }
  0x45   : > { %811 = shalt.err (!%p808_p10)
}
  0x46   : > { %s1285_s2 = smov 8   ;;  %s1286_s10 = smov 128  }
  0x47   : > { %700 = dma.hbm_to_vmem [thread:$0]  (!%p1077_p11), %s1074_s28, 256, %s1081_s6, %s1088_s23, %s1286_s10, %s1286_s10, %s1285_s2  }
  0x48   : > { %s233_s13 = scalar_lea.vmem [#allocation5], %s1069_s17  ;;  %s229_s27 = sand.u32 1, %s942_s21  }
  0x49   : > { %s240_s11 = sshll.u32 %s233_s13, 4  ;;  %s230_s29 = scalar_lea.sflag [#allocation6], %s229_s27  ;;  %s1120_s11 = int_to_ptr.vmem [resolvable:$true] %s240_s11 }
  0x4a   : > { %s812_s15 = scalar_lea.hbm %s1086_s12, 256  ;;  %s817_s8 = scalar_lea.hbm %s1259_s1, 512 }
  0x4b   : > { %p813_p1 = scmp.ne.s32.totalorder %s1086_s12, %s812_s15  ;;  %p818_p3 = scmp.lt.s32.totalorder %s1086_s12, %s1259_s1 }
  0x4c   : > { %p819_p9 = scmp.lt.s32.totalorder %s817_s8, %s812_s15 }
  0x4d   : > { %p815_p4 = pnand %p813_p1, %p786_p7 }
  0x4e   : > { %p820_p12 = por %p819_p9, %p818_p3 }
  0x4f   : > { %p816_p6 = pneg %p815_p4 }
  0x51   : > { %p821_p13 = pnand %p820_p12, %p816_p6 }
  0x53   : > { %824 = shalt.err (!%p821_p13)
}
  0x54   : > { %s825_s17 = scalar_lea.vmem %s1120_s11, 256  ;;  %s948_s28 = smov [#allocation5]  }
  0x55   : > { %p826_p0 = scmp.ne.s32.totalorder %s1120_s11, %s825_s17  ;;  %s830_s6 = sshll.u32 %s948_s28, 4  ;;  %s831_s6 = int_to_ptr.vmem [resolvable:$false] %s830_s6 }
  0x56   : > { %s832_s23 = scalar_lea.vmem %s831_s6, 512  ;;  %p833_p10 = scmp.lt.s32.totalorder %s1120_s11, %s831_s6 }
  0x57   : > { %p828_p5 = pnand %p826_p0, %p786_p7  ;;  %p834_p1 = scmp.lt.s32.totalorder %s832_s23, %s825_s17 }
  0x59   : > { %p829_p2 = pneg %p828_p5  ;;  %p835_p4 = por %p834_p1, %p833_p10 }
  0x5b   : > { %p836_p3 = pnand %p835_p4, %p829_p2 }
  0x5d   : > { %839 = shalt.err (!%p836_p3)
}
  0x5e   : > { %703 = dma.hbm_to_vmem [thread:$0]  (!%p1077_p11), %s1086_s12, 256, %s1120_s11, %s230_s29, %s1286_s10, %s1286_s10, %s1285_s2  }
  0x5f   : > { %252 = sbr.rel (%p1025_p8) target bundleno = 574 (0x23e), region = 36  ;;  %s1150_s0 = sand.u32 (!%p1025_p8), 1, %s934_s19  }
  0x60   : > { %s1153_s20 = sshll.u32 (!%p1025_p8), %s1150_s0, 4  ;;  %s255_s13 = scalar_lea.sflag (!%p1025_p8), [#allocation3], %s1150_s0 }
  0x61   : > { %s258_s7 = scalar_lea.vmem (!%p1025_p8), [#allocation2], %s1153_s20  ;;  %p1287_p7 = scmp.ne.s32.totalorder (!%p1025_p8), %s1275_s24, 0 }
  0x64   : > { %909 = dma.done.wait (%p1287_p7), %s255_s13, 256  }
  0x65   : > { %911 = vsyncadd (%p1287_p7), %s255_s13, 4294967040  ;;  %s263_s26 = sand.u32 1, %s1006_s22   ;;  %s267_s2 = scalar_lea.vmem [#allocation5], %s1153_s20 }
  0x66   : > { %s264_s12 = scalar_lea.sflag [#allocation6], %s263_s26 }
  0x67   : > { %913 = dma.done.wait (%p1287_p7), %s264_s12, 256  }
  0x68   : > { %915 = vsyncadd (%p1287_p7), %s264_s12, 4294967040  ;;  %p1288_p8 = scmp.eq.s32.totalorder %s1006_s22, 0 }
  0x6a   : > { %917 = dma.done.wait (%p1288_p8), [#allocation6], 512   ;;  %p1289_p11 = pmov %p1288_p8 }
  0x6b   : > { %v949_v0 = vmov 0.0   ;;  %vm950_vm0 = vmmov 0   ;;  %v327_v1 = vld [vmem:[#allocation7 + $0x10] sm:$0xff]  ;;  %v328_v2 = vld [vmem:[#allocation7 + $0x18] sm:$0xff]  ;;  %vm338_vm1 = vcmask 261120   ;;  %vm313_vm2 = vcmask 130048  }
  0x6c   : > { %919 = vsyncadd (%p1289_p11), [#allocation6], 4294966784  ;;  %667 = vmatprep.subr.bf16.mxu0 %v949_v0  ;;  %671 = vmatprep.mubr.msk.bf16.mxu0 %vm950_vm0, %v949_v0  ;;  %v330_v3 = vpack.c.bf16 %v328_v2, %v327_v1  ;;  %v325_v4 = vld [vmem:[#allocation7] sm:$0xff]  ;;  %v326_v5 = vld [vmem:[#allocation7 + $0x8] sm:$0xff]  ;;  %s661_s11 = sshll.u32 %s1006_s22, 8  ;;  %s300_s27 = scalar_lea.vmem [#allocation8], %s1153_s20 }
  0x6d   : > { %675 = vmatprep.subr.bf16.mxu1 %v949_v0  ;;  %677 = vmatprep.mubr.msk.bf16.mxu1 %vm950_vm0, %v949_v0  ;;  %v311_v6 = vld [vmem:[%s267_s2] sm:$0xff]  ;;  %v312_v7 = vld [vmem:[%s267_s2 + $0x8] sm:$0xff]  ;;  %v329_v11 = vpack.c.bf16 %v326_v5, %v325_v4  ;;  %s483_s29 = sshll.u32 %s300_s27, 4  ;;  %s1190_s16 = scalar_lea.hbm %s1262_s4, %s661_s11  ;;  %s1192_s29 = int_to_ptr.vmem [resolvable:$true] %s483_s29 }
  0x6e   : > { %v346_v8 = vsel %vm338_vm1, %v330_v3, 0  ;;  %v314_v9 = vsel %vm313_vm2, %v311_v6, 0.0  ;;  %v391_v10 = vpack.c.bf16 %v312_v7, %v311_v6  ;;  %v317_v12 = vsel %vm313_vm2, %v312_v7, 0.0  ;;  %v309_v14 = vld [vmem:[%s258_s7] sm:$0xff]  ;;  %v310_v15 = vld [vmem:[%s258_s7 + $0x8] sm:$0xff]  ;;  %s465_s8 = scalar_lea.sflag [#allocation4], %s1150_s0 }
  0x6f   : > { %668 = vmatpush3.bf16.xpose.msra.mxu0 %v346_v8  ;;  %315 = vadd.xlane.f32.xlu0 %v314_v9  ;;  %v343_v13 = vsel %vm338_vm1, %v329_v11, 0  ;;  %v324_v16 = vpack.c.bf16 %v310_v15, %v309_v14  ;;  %v649_v21 = vld [vmem:[%s1261_s3] ss:$0 sm:$0xff]  ;;  %s840_s17 = scalar_lea.vmem %s1192_s29, 256  ;;  %p1290_p9 = scmp.ne.s32.totalorder %s1282_s14, 0 }
  0x70   : > { %669 = vmatprep.subr.bf16.mxu0 %v949_v0  ;;  %p841_p6 = scmp.ne.s32.totalorder %s1192_s29, %s840_s17  ;;  %s951_s28 = smov [#allocation8]  }
  0x71   : > { %s844_s6 = sshll.u32 %s951_s28, 4  ;;  %s845_s6 = int_to_ptr.vmem [resolvable:$false] %s844_s6 }
  0x72   : > { %p842_p12 = pnand %p841_p6, %p1290_p9  ;;  %s846_s23 = scalar_lea.vmem %s845_s6, 512 }
  0x73   : > { %318 = vadd.xlane.f32.xlu0 %v317_v12  ;;  %p847_p0 = scmp.lt.s32.totalorder %s1192_s29, %s845_s6  ;;  %p848_p5 = scmp.lt.s32.totalorder %s846_s23, %s840_s17 }
  0x74   : > { %p843_p13 = pneg %p842_p12 }
  0x75   : > { %p849_p2 = por %p848_p5, %p847_p0 }
  0x77   : > { %670 = vmatpush3.bf16.xpose.msra.mxu0 %v343_v13  ;;  %p850_p10 = pnand %p849_p2, %p843_p13 }
  0x7e   : > { %672 = vmatmul.mubr.msk.bf16.vlgmr.msra.gmra.mxu0 %vm338_vm1, %v324_v16 }
  0xf8   : > { %v316_v17 = vpop.xlane.xlu0 %315 }
  0xf9   : > { %v320_v19 = vadd.f32 1.0, %v316_v17 }
  0xfb   : > { %754 = vrsqrt.f32 %v320_v19 }
  0xfc   : > { %v319_v18 = vpop.xlane.xlu0 %318 }
  0xfd   : > { %v321_v20 = vadd.f32 1.0, %v319_v18 }
  0xff   : > { %756 = vrsqrt.f32 %v321_v20 }
 0x108   : > { %v755_v24 = vpop.eup %754 }
 0x10c   : > { %v757_v26 = vpop.eup %756 }
 0x13e   : > { %v382_v22 = vpop.f32.mrf.mxu0 }
 0x13f   : > { %v383_v25 = vadd.f32 %v649_v21, %v382_v22 }
 0x140   : > { %v673_v23 = vpop.f32.mrf.mxu0 }
 0x141   : > { %v389_v30 = vmul.f32 %v755_v24, %v383_v25 }
 0x142   : > { %v385_v27 = vpop.f32.mrf.mxu0 }
 0x143   : > { %v386_v28 = vadd.f32 %v649_v21, %v385_v27 }
 0x144   : > { %v674_v29 = vpop.f32.mrf.mxu0 }
 0x145   : > { %v390_v31 = vmul.f32 %v757_v26, %v386_v28 }
 0x147   : > { %v392_v32 = vpack.c.bf16 %v390_v31, %v389_v30 }
 0x149   : > { %676 = vmatpush3.bf16.msra.mxu1 %v392_v32 }
 0x14c   : > { %678 = vmatmul.mubr.msk.bf16.vlgmr.msra.gmra.mxu1 %vm313_vm2, %v391_v10 }
 0x20c   : > { %v430_v33 = vpop.f32.mrf.mxu1 }
 0x20d   : > { %v431_v34 = vadd.f32 %v430_v33, %v389_v30 }
 0x20e   : > { %v679_v35 = vpop.f32.mrf.mxu1 }
 0x20f   : > { %v437_v36 = vmul.f32 %v755_v24, %v431_v34 }
 0x210   : > { %v433_v37 = vpop.f32.mrf.mxu1 }
 0x211   : > { %439 = vst.msk [vmem:[%s300_s27] sm:$0xff] %vm338_vm1, %v437_v36  ;;  %v434_v38 = vadd.f32 %v433_v37, %v390_v31  ;;  %v452_v40 = vmul.f32 %v437_v36, %v437_v36  ;;  %v441_v42 = vsel %vm338_vm1, %v437_v36, 0.0 }
 0x212   : > { %v680_v39 = vpop.f32.mrf.mxu1 }
 0x213   : > { %v438_v41 = vmul.f32 %v757_v26, %v434_v38 }
 0x215   : > { %440 = vst.msk [vmem:[%s300_s27 + $0x8] sm:$0xff] %vm338_vm1, %v438_v41  ;;  %v442_v43 = vsel %vm338_vm1, %v438_v41, 0.0  ;;  %v453_v44 = vmul.f32 %v438_v41, %v438_v41 }
 0x216   : > { %v443_v45 = vadd.f32 %v442_v43, %v441_v42 }
 0x217   : > { %853 = shalt.err (!%p850_p10)
}
 0x218   : > { %s854_s20 = scalar_lea.hbm %s1190_s16, 256  ;;  %s858_s26 = scalar_lea.hbm %s1262_s4, 512 }
 0x219   : > { %p855_p1 = scmp.ne.s32.totalorder %s1190_s16, %s854_s20  ;;  %p859_p7 = scmp.lt.s32.totalorder %s1190_s16, %s1262_s4 }
 0x21a   : > { %p860_p8 = scmp.lt.s32.totalorder %s858_s26, %s854_s20 }
 0x21b   : > { %p856_p4 = pnand %p855_p1, %p1290_p9 }
 0x21c   : > { %p861_p11 = por %p860_p8, %p859_p7 }
 0x21d   : > { %p857_p3 = pneg %p856_p4 }
 0x21f   : > { %p862_p6 = pnand %p861_p11, %p857_p3 }
 0x221   : > { %865 = shalt.err (!%p862_p6)
}
 0x222   : > { %s952_s24 = smov 128   ;;  %s953_s10 = smov 8   ;;  %v454_v46 = vsel %vm338_vm1, %v452_v40, 0.0  ;;  %v455_v47 = vsel %vm338_vm1, %v453_v44, 0.0  ;;  %v444_v48 = vrot.slane %v443_v45, 4  ;;  %vm450_vm3 = vcmask 253952  }
 0x223   : > { %689 = dma.vmem_to_hbm [thread:$0]  (%p1290_p9), %s1192_s29, 256, %s1190_s16, %s465_s8, %s952_s24, %s952_s24, %s953_s10   ;;  %v456_v49 = vadd.f32 %v455_v47, %v454_v46 }
 0x224   : > { %v445_v50 = vadd.f32 %v444_v48, %v443_v45  ;;  %s648_s11 = sshll.u32 %s1150_s0, 1  ;;  %s656_s27 = sshll.u32 %s1006_s22, 5 }
 0x225   : > { %v457_v51 = vrot.slane %v456_v49, 4  ;;  %s307_s29 = scalar_lea.vmem [#allocation9], %s648_s11  ;;  %s497_s8 = scalar_lea.hbm %s1263_s5, %s656_s27 }
 0x226   : > { %v446_v52 = vrot.slane %v445_v50, 2  ;;  %s499_s15 = sshll.u32 %s307_s29, 4  ;;  %s470_s17 = scalar_lea.sflag [#allocation10], %s1150_s0  ;;  %s500_s15 = int_to_ptr.vmem [resolvable:$true] %s499_s15 }
 0x227   : > { %v458_v53 = vadd.f32 %v457_v51, %v456_v49  ;;  %s866_s28 = scalar_lea.vmem %s500_s15, 32  ;;  %s954_s6 = smov [#allocation9]  }
 0x228   : > { %v447_v54 = vadd.f32 %v446_v52, %v445_v50  ;;  %p867_p12 = scmp.ne.s32.totalorder %s500_s15, %s866_s28  ;;  %s870_s22 = sshll.u32 %s954_s6, 4  ;;  %s871_s22 = int_to_ptr.vmem [resolvable:$false] %s870_s22 }
 0x229   : > { %v459_v55 = vrot.slane %v458_v53, 2  ;;  %s872_s23 = scalar_lea.vmem %s871_s22, 64  ;;  %p873_p5 = scmp.lt.s32.totalorder %s500_s15, %s871_s22 }
 0x22a   : > { %v448_v56 = vrot.slane %v447_v54, 1  ;;  %p868_p13 = pnand %p867_p12, %p1290_p9  ;;  %p874_p2 = scmp.lt.s32.totalorder %s872_s23, %s866_s28 }
 0x22b   : > { %v460_v57 = vadd.f32 %v459_v55, %v458_v53 }
 0x22c   : > { %v449_v58 = vadd.f32 %v448_v56, %v447_v54  ;;  %p869_p0 = pneg %p868_p13  ;;  %p875_p10 = por %p874_p2, %p873_p5 }
 0x22d   : > { %v461_v59 = vrot.slane %v460_v57, 1 }
 0x22e   : > { %451 = vst.msk [vmem:[%s307_s29] sm:$0x1] %vm450_vm3, %v449_v58  ;;  %p876_p1 = pnand %p875_p10, %p869_p0 }
 0x22f   : > { %v462_v60 = vadd.f32 %v461_v59, %v460_v57 }
 0x231   : > { %463 = vst.msk [vmem:[%s307_s29 + $0x1] sm:$0x1] %vm450_vm3, %v462_v60 }
 0x232   : > { %879 = shalt.err (!%p876_p1)
}
 0x233   : > { %s880_s20 = scalar_lea.hbm %s497_s8, 32  ;;  %s884_s7 = scalar_lea.hbm %s1263_s5, 64 }
 0x234   : > { %p881_p4 = scmp.ne.s32.totalorder %s497_s8, %s880_s20  ;;  %p885_p8 = scmp.lt.s32.totalorder %s497_s8, %s1263_s5 }
 0x235   : > { %p886_p11 = scmp.lt.s32.totalorder %s884_s7, %s880_s20 }
 0x236   : > { %p882_p3 = pnand %p881_p4, %p1290_p9 }
 0x237   : > { %p887_p6 = por %p886_p11, %p885_p8 }
 0x238   : > { %p883_p7 = pneg %p882_p3 }
 0x23a   : > { %p888_p12 = pnand %p887_p6, %p883_p7 }
 0x23c   : > { %891 = shalt.err (!%p888_p12)
}
 0x23d   : > { %690 = dma.vmem_to_hbm [thread:$0]  (%p1290_p9), %s500_s15, 32, %s497_s8, %s470_s17  }
 0x23e PF: > { %s511_s2 = sand.u32 1, %s930_s18   ;;  %p1291_p13 = scmp.ne.s32.totalorder %s1276_s25, 0 }
 0x23f   : > { %p1292_p0 = scmp.ge.s32.totalorder %s942_s21, 2  ;;  %s512_s24 = scalar_lea.sflag [#allocation4], %s511_s2 }
 0x241   : > { %p705_p5 = pnand %p1292_p0, %p1291_p13 }
 0x243   : > { %p706_p2 = pneg %p705_p5 }
 0x245   : > { %921 = dma.done.wait (%p706_p2), %s512_s24, 256  }
 0x246   : > { %923 = vsyncadd (%p706_p2), %s512_s24, 4294967040  ;;  %s521_s10 = scalar_lea.sflag [#allocation10], %s511_s2 }
 0x247   : > { %925 = dma.done.wait (%p706_p2), %s521_s10, 32  }
 0x248   : > { %927 = vsyncadd (%p706_p2), %s521_s10, 4294967264  ;;  %s1293_s11 = sld [smem:[#allocation16_spill]]  ;;  %p25_p9 = scmp.ge.s32.totalorder %s1039_s30, 4  }
 0x249   : > { %s1294_s20 = sld [smem:[#allocation17_spill]]  ;;  %s1295_s18 = smov %s934_s19 }
 0x24a   : > { %s1297_s21 = smov %s1039_s30  ;;  %27 = sbr.rel (!%p25_p9) target bundleno = 12 (0xc), region = 115 }
 0x24e   : > { %s1296_s19 = smov %s1293_s11 }
 0x24f   :  { %526 = vsyncpa [#allocation3], 1 }
 0x250   :  { %528 = vsyncpa [#allocation3 + $0x1], 1 }
 0x251   :  { %529 = vsyncpa [#allocation6], 1 }
 0x252   :  { %531 = vsyncpa [#allocation6 + $0x1], 1 }
 0x253   :  { %532 = vsyncpa [#allocation4], 1 }
 0x254   :  { %534 = vsyncpa [#allocation4 + $0x1], 1 }
 0x255   :  { %535 = vsyncpa [#allocation10], 1 }
 0x256   :  { %537 = vsyncpa [#allocation10 + $0x1], 1 }

</bundles_post_ra>
